<compile_context>
chip_gen: v6e
topology: v6e:2x2x1
jax: 0.10.0
libtpu: 0.0.40
codegen_flags: <defaults>
</compile_context>

<pallas_src>
import math

import jax
import jax.numpy as jnp
import numpy as np
from jax.experimental import pallas as pl
from jax.experimental.pallas import tpu as pltpu

_NAT = 1.0 / math.log(2.0)
_THRES = 0.999
_EPS = 1e-12


def _approx_standard_normal_cdf(x):
    return 0.5 * (1.0 + jnp.tanh((2.0 / math.pi) ** 0.5 * (x + 0.044715 * x * x * x)))


def vlb_loss_kernel(x0_ref, xt_ref, pm_ref, plv_ref,
                    c1_ref, c2_ref, qlv_ref, eqlv_ref, t_ref,
                    out_ref):
    li = pl.program_id(1)                       # lane-tile index (reduction axis)

    # Native-dtype transport; upcast for the math.
    x0 = x0_ref[...].astype(jnp.float32)        # [Rblk, Dt]
    xt = xt_ref[...].astype(jnp.float32)
    pm = pm_ref[...].astype(jnp.float32)
    plv = plv_ref[...].astype(jnp.float32)
    c1 = c1_ref[...]                            # [Rblk, 1]
    c2 = c2_ref[...]
    qlv = qlv_ref[...]                          # posterior log variance (per row)
    eqlv = eqlv_ref[...]                        # exp(qlv), precomputed per row
    t = t_ref[...]                              # [Rblk, 1] int32

    # Single per-element exp; exp(-plv) and exp(qlv - plv) derived from it.
    inv_stdv = jnp.exp(-0.5 * plv)
    inv_var = inv_stdv * inv_stdv

    # q_posterior mean + normal_kl(mean, qlv, pred_mean, pred_log_var)
    mean = c1 * x0 + c2 * xt
    diff = mean - pm
    kl = 0.5 * (plv - qlv - 1.0 + eqlv * inv_var + diff * diff * inv_var)

    # discretized_gaussian_log_likelihood(x0, mean=pm, log_scale=0.5*plv)
    # with a single fused log over the selected argument.
    centered = x0 - pm
    cdf_plus = _approx_standard_normal_cdf(inv_stdv * (centered + 1.0 / 255.0))
    cdf_min = _approx_standard_normal_cdf(inv_stdv * (centered - 1.0 / 255.0))
    log_arg = jnp.where(
        x0 < -_THRES, cdf_plus,
        jnp.where(x0 > _THRES, 1.0 - cdf_min, cdf_plus - cdf_min))
    nll = -jnp.log(jnp.maximum(log_arg, _EPS))

    # t == 0 selects decoder NLL, otherwise KL (per row; rows of a sample share t).
    loss = jnp.where(t == 0, nll, kl)
    partial = jnp.sum(loss, axis=-1, keepdims=True)     # [Rblk, 1] partial row sums

    @pl.when(li == 0)
    def _():
        out_ref[...] = jnp.zeros_like(out_ref)

    out_ref[...] += partial


def _choose_sublane_fill(B, D):
    """Smallest S so that B*S is a multiple of 8 and D % S == 0 (fallback 1)."""
    if B % 8 == 0:
        return 1
    for s in range(1, 65):
        if D % s == 0 and (B * s) % 8 == 0:
            return s
    return 1


def _choose_row_block(R):
    """Row-block size: multiple of 8 dividing R (or all of R); <= R//2 when
    possible so the 'parallel' row axis has >=2 blocks for megacore chips."""
    if R <= 8 or R % 8 != 0:
        return R
    cap = max(8, R // 2)
    best = 8
    for d in range(8, cap + 1, 8):
        if R % d == 0:
            best = d
    return best


def _choose_lane_tile(D2, Rblk, itemsize, budget_bytes=1 << 20):
    """Largest multiple of 128 dividing D2 with Rblk*Dt*itemsize <= budget."""
    if D2 % 128 != 0:
        return D2                       # must use the full (untiled) lane extent
    max_elems = max(128, budget_bytes // max(1, Rblk * itemsize))
    best = 128
    d = 128
    while d <= min(D2, max_elems):
        if D2 % d == 0:
            best = d
        d += 128
    return best


def make_discrete_gaussian_schedule(num_steps=1000, beta_start=1e-4, beta_end=0.02):
    """Deterministic linear-beta DiscreteGaussianSchedule coefficients."""
    betas = jnp.linspace(beta_start, beta_end, num_steps, dtype=jnp.float32)
    alphas = 1.0 - betas
    alphas_cumprod = jnp.cumprod(alphas)
    alphas_cumprod_prev = jnp.concatenate([jnp.ones((1,), jnp.float32),
                                           alphas_cumprod[:-1]])
    posterior_variance = betas * (1.0 - alphas_cumprod_prev) / (1.0 - alphas_cumprod)
    posterior_log_variance_clipped = jnp.log(
        jnp.concatenate([posterior_variance[1:2], posterior_variance[1:]]))
    posterior_mean_coef1 = (betas * jnp.sqrt(alphas_cumprod_prev)
                            / (1.0 - alphas_cumprod))
    posterior_mean_coef2 = ((1.0 - alphas_cumprod_prev) * jnp.sqrt(alphas)
                            / (1.0 - alphas_cumprod))
    return {
        "posterior_mean_coef1": posterior_mean_coef1,
        "posterior_mean_coef2": posterior_mean_coef2,
        "posterior_log_variance_clipped": posterior_log_variance_clipped,
    }


def vlb_loss(pred_mean, pred_log_var, x0, xt, t, schedule):
    B = x0.shape[0]
    D = int(np.prod(x0.shape[1:]))

    # Sublane fill: [B, D] -> [B*S, D/S] so the vreg sublane axis is used fully.
    S = _choose_sublane_fill(B, D)
    R = B * S
    D2 = D // S

    Rblk = _choose_row_block(R)
    itemsize = x0.dtype.itemsize
    Dt = _choose_lane_tile(D2, Rblk, itemsize)
    n_rows = R // Rblk
    n_lanes = D2 // Dt

    # Big tensors: native dtype, lane-dense [R, D2] layout (no wrapper astype).
    flat = lambda a: a.reshape(R, D2)

    # Per-sample schedule scalars gathered at t, repeated over sublane-fill rows.
    col = lambda v: jnp.repeat(v.astype(jnp.float32), S).reshape(R, 1)
    c1 = col(schedule["posterior_mean_coef1"][t])
    c2 = col(schedule["posterior_mean_coef2"][t])
    qlv_b = schedule["posterior_log_variance_clipped"][t].astype(jnp.float32)
    qlv = col(qlv_b)
    eqlv = col(jnp.exp(qlv_b))
    t2 = jnp.repeat(t.astype(jnp.int32), S).reshape(R, 1)

    big_spec = pl.BlockSpec((Rblk, Dt), lambda r, l: (r, l))
    col_spec = pl.BlockSpec((Rblk, 1), lambda r, l: (r, 0))

    partials = pl.pallas_call(
        vlb_loss_kernel,
        out_shape=jax.ShapeDtypeStruct((R, 1), jnp.float32),
        grid_spec=pltpu.PrefetchScalarGridSpec(
            num_scalar_prefetch=0,
            grid=(n_rows, n_lanes),
            in_specs=[big_spec] * 4 + [col_spec] * 5,
            out_specs=pl.BlockSpec((Rblk, 1), lambda r, l: (r, 0)),
        ),
        compiler_params=pltpu.CompilerParams(
            dimension_semantics=("parallel", "arbitrary"),
            vmem_limit_bytes=32 * 1024 * 1024),
    )(flat(x0), flat(xt), flat(pred_mean), flat(pred_log_var),
      c1, c2, qlv, eqlv, t2)

    # mean_b( NAT/D * sum over that sample's rows ) == NAT/(D*B) * sum over all rows.
    return jnp.sum(partials) * (_NAT / (D * B))


def vlb_loss_reference(pred_mean, pred_log_var, x0, xt, t, schedule):
    """Pure-JAX reference reproducing the PyTorch forward pass."""
    B = x0.shape[0]
    shape = (B,) + (1,) * (x0.ndim - 1)
    c1 = schedule["posterior_mean_coef1"][t].reshape(shape)
    c2 = schedule["posterior_mean_coef2"][t].reshape(shape)
    log_var = jnp.broadcast_to(
        schedule["posterior_log_variance_clipped"][t].reshape(shape), x0.shape)
    mean = c1 * x0 + c2 * xt

    kl = 0.5 * (-1.0 + pred_log_var - log_var + jnp.exp(log_var - pred_log_var)
                + (mean - pred_mean) ** 2 * jnp.exp(-pred_log_var))
    kl = kl.reshape(B, -1).mean(axis=1) * _NAT

    log_scale = 0.5 * pred_log_var
    centered = x0 - pred_mean
    inv_stdv = jnp.exp(-log_scale)
    cdf_plus = _approx_standard_normal_cdf(inv_stdv * (centered + 1.0 / 255.0))
    cdf_min = _approx_standard_normal_cdf(inv_stdv * (centered - 1.0 / 255.0))
    log_cdf_plus = jnp.log(jnp.maximum(cdf_plus, _EPS))
    log_one_minus = jnp.log(jnp.maximum(1.0 - cdf_min, _EPS))
    cdf_delta = cdf_plus - cdf_min
    log_probs = jnp.where(x0 < -_THRES, log_cdf_plus,
                          jnp.where(x0 > _THRES, log_one_minus,
                                    jnp.log(jnp.maximum(cdf_delta, _EPS))))
    decoder_nll = (-log_probs).reshape(B, -1).mean(axis=1) * _NAT

    losses = jnp.where(t == 0, decoder_nll, kl)
    return losses.mean()


if __name__ == "__main__":
    key = jax.random.PRNGKey(0)
    k1, k2, k3, k4 = jax.random.split(key, 4)

    B, C, H, W = 2, 4, 16, 16
    x0 = jax.random.uniform(k1, (B, C, H, W), jnp.float32, minval=-1.0, maxval=1.0)
    xt = jax.random.normal(k2, (B, C, H, W), jnp.float32)
    pred_mean = 0.5 * jax.random.normal(k3, (B, C, H, W), jnp.float32)
    pred_log_var = -4.0 + 0.5 * jax.random.normal(k4, (B, C, H, W), jnp.float32)
    t = jnp.array([0, 37], dtype=jnp.int32)   # exercises both NLL and KL branch

    schedule = make_discrete_gaussian_schedule(num_steps=1000)

    loss = jax.block_until_ready(vlb_loss(pred_mean, pred_log_var, x0, xt, t, schedule))
    loss_ref = jax.block_until_ready(
        vlb_loss_reference(pred_mean, pred_log_var, x0, xt, t, schedule))

    np.testing.assert_allclose(np.asarray(loss), np.asarray(loss_ref),
                               rtol=1e-5, atol=1e-5)
    print("KERNEL_OK")
</pallas_src>

<mosaic_0001>
module attributes {stable_mosaic.version = 11 : i64} {
  func.func @vlb_loss_kernel(%arg0: i32, %arg1: i32, %arg2: memref<8x256xf32, #tpu.memory_space<vmem>>, %arg3: memref<8x256xf32, #tpu.memory_space<vmem>>, %arg4: memref<8x256xf32, #tpu.memory_space<vmem>>, %arg5: memref<8x256xf32, #tpu.memory_space<vmem>>, %arg6: memref<8x1xf32, #tpu.memory_space<vmem>>, %arg7: memref<8x1xf32, #tpu.memory_space<vmem>>, %arg8: memref<8x1xf32, #tpu.memory_space<vmem>>, %arg9: memref<8x1xf32, #tpu.memory_space<vmem>>, %arg10: memref<8x1xi32, #tpu.memory_space<vmem>>, %arg11: memref<8x1xf32, #tpu.memory_space<vmem>>) attributes {dimension_semantics = [#tpu.dimension_semantics<parallel>, #tpu.dimension_semantics<arbitrary>], iteration_bounds = array<i64: 1, 1>, scalar_prefetch = 0 : i64, scratch_operands = 0 : i64, tpu.core_type = #tpu.core_type<tc>, window_params = [{transform_indices = @transform_0, window_bounds = array<i64: 8, 256>}, {transform_indices = @transform_1, window_bounds = array<i64: 8, 256>}, {transform_indices = @transform_2, window_bounds = array<i64: 8, 256>}, {transform_indices = @transform_3, window_bounds = array<i64: 8, 256>}, {transform_indices = @transform_4, window_bounds = array<i64: 8, 1>}, {transform_indices = @transform_5, window_bounds = array<i64: 8, 1>}, {transform_indices = @transform_6, window_bounds = array<i64: 8, 1>}, {transform_indices = @transform_7, window_bounds = array<i64: 8, 1>}, {transform_indices = @transform_8, window_bounds = array<i64: 8, 1>}, {transform_indices = @transform_9, window_bounds = array<i64: 8, 1>}]} {
    %c0 = arith.constant 0 : index
    %c0_0 = arith.constant 0 : index
    %0 = vector.load %arg2[%c0, %c0_0] : memref<8x256xf32, #tpu.memory_space<vmem>>, vector<8x256xf32>
    %c0_1 = arith.constant 0 : index
    %c0_2 = arith.constant 0 : index
    %1 = vector.load %arg3[%c0_1, %c0_2] : memref<8x256xf32, #tpu.memory_space<vmem>>, vector<8x256xf32>
    %c0_3 = arith.constant 0 : index
    %c0_4 = arith.constant 0 : index
    %2 = vector.load %arg4[%c0_3, %c0_4] : memref<8x256xf32, #tpu.memory_space<vmem>>, vector<8x256xf32>
    %c0_5 = arith.constant 0 : index
    %c0_6 = arith.constant 0 : index
    %3 = vector.load %arg5[%c0_5, %c0_6] : memref<8x256xf32, #tpu.memory_space<vmem>>, vector<8x256xf32>
    %c0_7 = arith.constant 0 : index
    %c0_8 = arith.constant 0 : index
    %4 = vector.load %arg6[%c0_7, %c0_8] : memref<8x1xf32, #tpu.memory_space<vmem>>, vector<8x1xf32>
    %c0_9 = arith.constant 0 : index
    %c0_10 = arith.constant 0 : index
    %5 = vector.load %arg7[%c0_9, %c0_10] : memref<8x1xf32, #tpu.memory_space<vmem>>, vector<8x1xf32>
    %c0_11 = arith.constant 0 : index
    %c0_12 = arith.constant 0 : index
    %6 = vector.load %arg8[%c0_11, %c0_12] : memref<8x1xf32, #tpu.memory_space<vmem>>, vector<8x1xf32>
    %c0_13 = arith.constant 0 : index
    %c0_14 = arith.constant 0 : index
    %7 = vector.load %arg9[%c0_13, %c0_14] : memref<8x1xf32, #tpu.memory_space<vmem>>, vector<8x1xf32>
    %c0_15 = arith.constant 0 : index
    %c0_16 = arith.constant 0 : index
    %8 = vector.load %arg10[%c0_15, %c0_16] : memref<8x1xi32, #tpu.memory_space<vmem>>, vector<8x1xi32>
    %cst = arith.constant -5.000000e-01 : f32
    %9 = vector.broadcast %cst : f32 to vector<8x256xf32>
    %10 = arith.mulf %9, %3 : vector<8x256xf32>
    %11 = math.exp %10 : vector<8x256xf32>
    %12 = arith.mulf %11, %11 : vector<8x256xf32>
    %13 = vector.broadcast %4 : vector<8x1xf32> to vector<8x256xf32>
    %14 = arith.mulf %13, %0 : vector<8x256xf32>
    %15 = vector.broadcast %5 : vector<8x1xf32> to vector<8x256xf32>
    %16 = arith.mulf %15, %1 : vector<8x256xf32>
    %17 = arith.addf %14, %16 : vector<8x256xf32>
    %18 = arith.subf %17, %2 : vector<8x256xf32>
    %19 = vector.broadcast %6 : vector<8x1xf32> to vector<8x256xf32>
    %20 = arith.subf %3, %19 : vector<8x256xf32>
    %cst_17 = arith.constant 1.000000e+00 : f32
    %21 = vector.broadcast %cst_17 : f32 to vector<8x256xf32>
    %22 = arith.subf %20, %21 : vector<8x256xf32>
    %23 = vector.broadcast %7 : vector<8x1xf32> to vector<8x256xf32>
    %24 = arith.mulf %23, %12 : vector<8x256xf32>
    %25 = arith.addf %22, %24 : vector<8x256xf32>
    %26 = arith.mulf %18, %18 : vector<8x256xf32>
    %27 = arith.mulf %26, %12 : vector<8x256xf32>
    %28 = arith.addf %25, %27 : vector<8x256xf32>
    %cst_18 = arith.constant 5.000000e-01 : f32
    %29 = vector.broadcast %cst_18 : f32 to vector<8x256xf32>
    %30 = arith.mulf %29, %28 : vector<8x256xf32>
    %31 = arith.subf %0, %2 : vector<8x256xf32>
    %cst_19 = arith.constant 0.00392156886 : f32
    %32 = vector.broadcast %cst_19 : f32 to vector<8x256xf32>
    %33 = arith.addf %31, %32 : vector<8x256xf32>
    %34 = arith.mulf %11, %33 : vector<8x256xf32>
    %cst_20 = arith.constant 4.471500e-02 : f32
    %35 = vector.broadcast %cst_20 : f32 to vector<8x256xf32>
    %36 = arith.mulf %35, %34 : vector<8x256xf32>
    %37 = arith.mulf %36, %34 : vector<8x256xf32>
    %38 = arith.mulf %37, %34 : vector<8x256xf32>
    %39 = arith.addf %34, %38 : vector<8x256xf32>
    %cst_21 = arith.constant 0.797884583 : f32
    %40 = vector.broadcast %cst_21 : f32 to vector<8x256xf32>
    %41 = arith.mulf %40, %39 : vector<8x256xf32>
    %42 = math.tanh %41 : vector<8x256xf32>
    %cst_22 = arith.constant 1.000000e+00 : f32
    %43 = vector.broadcast %cst_22 : f32 to vector<8x256xf32>
    %44 = arith.addf %43, %42 : vector<8x256xf32>
    %cst_23 = arith.constant 5.000000e-01 : f32
    %45 = vector.broadcast %cst_23 : f32 to vector<8x256xf32>
    %46 = arith.mulf %45, %44 : vector<8x256xf32>
    %cst_24 = arith.constant 0.00392156886 : f32
    %47 = vector.broadcast %cst_24 : f32 to vector<8x256xf32>
    %48 = arith.subf %31, %47 : vector<8x256xf32>
    %49 = arith.mulf %11, %48 : vector<8x256xf32>
    %cst_25 = arith.constant 4.471500e-02 : f32
    %50 = vector.broadcast %cst_25 : f32 to vector<8x256xf32>
    %51 = arith.mulf %50, %49 : vector<8x256xf32>
    %52 = arith.mulf %51, %49 : vector<8x256xf32>
    %53 = arith.mulf %52, %49 : vector<8x256xf32>
    %54 = arith.addf %49, %53 : vector<8x256xf32>
    %cst_26 = arith.constant 0.797884583 : f32
    %55 = vector.broadcast %cst_26 : f32 to vector<8x256xf32>
    %56 = arith.mulf %55, %54 : vector<8x256xf32>
    %57 = math.tanh %56 : vector<8x256xf32>
    %cst_27 = arith.constant 1.000000e+00 : f32
    %58 = vector.broadcast %cst_27 : f32 to vector<8x256xf32>
    %59 = arith.addf %58, %57 : vector<8x256xf32>
    %cst_28 = arith.constant 5.000000e-01 : f32
    %60 = vector.broadcast %cst_28 : f32 to vector<8x256xf32>
    %61 = arith.mulf %60, %59 : vector<8x256xf32>
    %cst_29 = arith.constant -9.990000e-01 : f32
    %62 = vector.broadcast %cst_29 : f32 to vector<8x256xf32>
    %63 = arith.cmpf olt, %0, %62 : vector<8x256xf32>
    %cst_30 = arith.constant 9.990000e-01 : f32
    %64 = vector.broadcast %cst_30 : f32 to vector<8x256xf32>
    %65 = arith.cmpf ogt, %0, %64 : vector<8x256xf32>
    %cst_31 = arith.constant 1.000000e+00 : f32
    %66 = vector.broadcast %cst_31 : f32 to vector<8x256xf32>
    %67 = arith.subf %66, %61 : vector<8x256xf32>
    %68 = arith.subf %46, %61 : vector<8x256xf32>
    %69 = arith.select %65, %67, %68 : vector<8x256xi1>, vector<8x256xf32>
    %70 = arith.select %63, %46, %69 : vector<8x256xi1>, vector<8x256xf32>
    %cst_32 = arith.constant 9.99999996E-13 : f32
    %71 = vector.broadcast %cst_32 : f32 to vector<8x256xf32>
    %72 = arith.maximumf %70, %71 : vector<8x256xf32>
    %73 = math.log %72 : vector<8x256xf32>
    %cst_33 = arith.constant 0.000000e+00 : f32
    %74 = vector.broadcast %cst_33 : f32 to vector<8x256xf32>
    %75 = arith.subf %74, %73 : vector<8x256xf32>
    %c0_i32 = arith.constant 0 : i32
    %76 = vector.broadcast %c0_i32 : i32 to vector<8x1xi32>
    %77 = arith.cmpi eq, %8, %76 : vector<8x1xi32>
    %78 = vector.shape_cast %77 : vector<8x1xi1> to vector<8x1xi1>
    %79 = vector.broadcast %78 : vector<8x1xi1> to vector<8x256xi1>
    %80 = arith.select %79, %75, %30 : vector<8x256xi1>, vector<8x256xf32>
    %cst_34 = arith.constant dense<0.000000e+00> : vector<8xf32>
    %81 = vector.multi_reduction <add>, %80, %cst_34 [1] : vector<8x256xf32> to vector<8xf32>
    %82 = vector.shape_cast %81 : vector<8xf32> to vector<8x1xf32>
    %c0_i32_35 = arith.constant 0 : i32
    %83 = arith.cmpi eq, %arg1, %c0_i32_35 : i32
    %84 = arith.extui %83 : i1 to i32
    %c0_i32_36 = arith.constant 0 : i32
    %85 = arith.cmpi ne, %84, %c0_i32_36 : i32
    scf.if %85 {
      %cst_41 = arith.constant 0.000000e+00 : f32
      %89 = vector.broadcast %cst_41 : f32 to vector<8x1xf32>
      %c0_42 = arith.constant 0 : index
      %c0_43 = arith.constant 0 : index
      %90 = vector.load %arg11[%c0_42, %c0_43] : memref<8x1xf32, #tpu.memory_space<vmem>>, vector<8x1xf32>
      tpu.vector_store %arg11[%c0_42, %c0_43], %89 {strides = array<i32>} : memref<8x1xf32, #tpu.memory_space<vmem>>, vector<8x1xf32>,
    } else {
    }
    %c0_37 = arith.constant 0 : index
    %c0_38 = arith.constant 0 : index
    %86 = vector.load %arg11[%c0_37, %c0_38] : memref<8x1xf32, #tpu.memory_space<vmem>>, vector<8x1xf32>
    %87 = arith.addf %86, %82 : vector<8x1xf32>
    %c0_39 = arith.constant 0 : index
    %c0_40 = arith.constant 0 : index
    %88 = vector.load %arg11[%c0_39, %c0_40] : memref<8x1xf32, #tpu.memory_space<vmem>>, vector<8x1xf32>
    tpu.vector_store %arg11[%c0_39, %c0_40], %87 {strides = array<i32>} : memref<8x1xf32, #tpu.memory_space<vmem>>, vector<8x1xf32>,
    return
  }
  func.func @transform_0(%arg0: i32, %arg1: i32) -> (i32, i32) {
    %c0_i32 = arith.constant 0 : i32
    return %arg0, %arg1 : i32, i32
  }
  func.func @transform_1(%arg0: i32, %arg1: i32) -> (i32, i32) {
    %c0_i32 = arith.constant 0 : i32
    return %arg0, %arg1 : i32, i32
  }
  func.func @transform_2(%arg0: i32, %arg1: i32) -> (i32, i32) {
    %c0_i32 = arith.constant 0 : i32
    return %arg0, %arg1 : i32, i32
  }
  func.func @transform_3(%arg0: i32, %arg1: i32) -> (i32, i32) {
    %c0_i32 = arith.constant 0 : i32
    return %arg0, %arg1 : i32, i32
  }
  func.func @transform_4(%arg0: i32, %arg1: i32) -> (i32, i32) {
    %c0_i32 = arith.constant 0 : i32
    %c0_i32_0 = arith.constant 0 : i32
    return %arg0, %c0_i32 : i32, i32
  }
  func.func @transform_5(%arg0: i32, %arg1: i32) -> (i32, i32) {
    %c0_i32 = arith.constant 0 : i32
    %c0_i32_0 = arith.constant 0 : i32
    return %arg0, %c0_i32 : i32, i32
  }
  func.func @transform_6(%arg0: i32, %arg1: i32) -> (i32, i32) {
    %c0_i32 = arith.constant 0 : i32
    %c0_i32_0 = arith.constant 0 : i32
    return %arg0, %c0_i32 : i32, i32
  }
  func.func @transform_7(%arg0: i32, %arg1: i32) -> (i32, i32) {
    %c0_i32 = arith.constant 0 : i32
    %c0_i32_0 = arith.constant 0 : i32
    return %arg0, %c0_i32 : i32, i32
  }
  func.func @transform_8(%arg0: i32, %arg1: i32) -> (i32, i32) {
    %c0_i32 = arith.constant 0 : i32
    %c0_i32_0 = arith.constant 0 : i32
    return %arg0, %c0_i32 : i32, i32
  }
  func.func @transform_9(%arg0: i32, %arg1: i32) -> (i32, i32) {
    %c0_i32 = arith.constant 0 : i32
    %c0_i32_0 = arith.constant 0 : i32
    return %arg0, %c0_i32 : i32, i32
  }
}

</mosaic_0001>

<bundles_post_ra>
// kernel: tpu_custom_call.1
= control target key start
LH: loop header
LB: loop body
LE: loop exit
PB: predicated region body
PF: predicated region fallthrough
CT: control target
= control target key end

     0   :  { %14 = vsyncpa [#allocation3], 0  ;;  %s244_s30 = smov [#allocation2]   ;;  %s384_s0 = inlined_call_operand.vmem [shape: f32[8,256], index: 0, kind: input, shape index: {}]   ;;  %s385_s1 = inlined_call_operand.vmem [shape: f32[8,256], index: 1, kind: input, shape index: {}]   ;;  %s386_s2 = inlined_call_operand.vmem [shape: f32[8,256], index: 2, kind: input, shape index: {}]   ;;  %s387_s3 = inlined_call_operand.hbm [shape: f32[8,256], index: 3, kind: input, shape index: {}]   ;;  %s388_s4 = inlined_call_operand.vmem [shape: f32[8,1], index: 4, kind: input, shape index: {}]   ;;  %s389_s5 = inlined_call_operand.vmem [shape: f32[8,1], index: 5, kind: input, shape index: {}]   ;;  %s390_s6 = inlined_call_operand.vmem [shape: f32[8,1], index: 6, kind: input, shape index: {}]   ;;  %s391_s7 = inlined_call_operand.vmem [shape: f32[8,1], index: 7, kind: input, shape index: {}]   ;;  %s392_s8 = inlined_call_operand.vmem [shape: s32[8,1], index: 8, kind: input, shape index: {}]   ;;  %s393_s9 = inlined_call_operand.vmem [shape: f32[8,1], index: 9, kind: output, shape index: {}]  }
   0x1   :  { %s27_s10 = sshll.u32 %s244_s30, 4  ;;  %s28_s10 = int_to_ptr.vmem [resolvable:$true] %s27_s10 }
   0x2   :  { %s230_s11 = scalar_lea.vmem %s28_s10, 256  ;;  %p235_p1 = scmp.lt.s32.totalorder %s28_s10, %s28_s10 }
   0x3   :  { %p231_p0 = scmp.ne.s32.totalorder %s28_s10, %s230_s11  ;;  %p236_p2 = scmp.lt.s32.totalorder %s230_s11, %s230_s11 }
   0x5   :  { %p237_p3 = por %p236_p2, %p235_p1 }
   0x7   :  { %p238_p4 = pnand %p237_p3, %p231_p0 }
   0x9   :  { %241 = shalt.err (!%p238_p4)
}
   0xa   :  { %30 = dma.hbm_to_vmem [thread:$0]  %s387_s3, 256, %s28_s10, [#allocation3]  }
   0xb   :  { %242 = dma.done.wait [#allocation3], 256  }
   0xc   :  { %243 = vsyncadd [#allocation3], 4294967040  ;;  %v245_v0 = vmov 0   ;;  %v52_v1 = vld [vmem:[%s388_s4] sm:$0xff]  ;;  %vm186_vm1 = vcmask 7168   ;;  %v246_v7 = vmov 0.0  }
   0xd   :  { %204 = vset.pattern.permute.xlu0 %v245_v0  ;;  %205 = vset.pattern.permute.xlu1 %v245_v0  ;;  %v54_v2 = vld [vmem:[%s390_s6] sm:$0xff]  ;;  %187 = vst.msk [vmem:[%s393_s9] sm:$0xff] %vm186_vm1, %v246_v7  ;;  %v321_v9 = vld [vmem:[#allocation2 + $0x8] sm:$0xff] }
   0xe   :  { %67 = vperm.xlu0 %204, %v52_v1   ;;  %85 = vperm.xlu1 %205, %v54_v2   ;;  %v56_v3 = vld [vmem:[%s392_s8] sm:$0xff]  ;;  %v58_v11 = vmul.f32 -0.5, %v321_v9  ;;  %v338_v16 = vld [vmem:[%s384_s0 + $0x8] sm:$0xff] }
   0xf   :  { %v53_v4 = vld [vmem:[%s389_s5] sm:$0xff]  ;;  %vm171_vm0 = vcmp.eq.s32.totalorder %v56_v3, 0  ;;  %v343_v17 = vld [vmem:[%s386_s2 + $0x8] sm:$0xff]  ;;  %vm154_vm3 = vcmp.gt.f32.partialorder %v338_v16, 0.999 }
  0x10   :  { %v55_v5 = vld [vmem:[%s391_s7] sm:$0xff]  ;;  %v172_v6 = vsel %vm171_vm0, 1, %v245_v0  ;;  %v61_v13 = vmul.f32 1.442695, %v58_v11  ;;  %v110_v19 = vsub.f32 %v338_v16, %v343_v17  ;;  %vm152_vm5 = vcmp.lt.f32.partialorder %v338_v16, -0.999 }
  0x11   :  { %v319_v8 = vld [vmem:[#allocation2] sm:$0xff] }
  0x12   :  { %74 = vperm.xlu0 %204, %v53_v4   ;;  %94 = vperm.xlu1 %205, %v55_v5   ;;  %v57_v10 = vmul.f32 -0.5, %v319_v8  ;;  %v328_v14 = vld [vmem:[%s384_s0] sm:$0xff]  ;;  %v200_v22 = vadd.f32 -0.003921569, %v110_v19  ;;  %v112_v25 = vadd.f32 0.003921569, %v110_v19 }
  0x13   :  { %v333_v15 = vld [vmem:[%s386_s2] sm:$0xff]  ;;  %vm153_vm2 = vcmp.gt.f32.partialorder %v328_v14, 0.999  ;;  %vm151_vm4 = vcmp.lt.f32.partialorder %v328_v14, -0.999 }
  0x14   :  { %v59_v12 = vmul.f32 1.442695, %v57_v10  ;;  %v109_v18 = vsub.f32 %v328_v14, %v333_v15 }
  0x16   :  { %174 = vperm.xlu0 %204, %v172_v6   ;;  %206 = vpow2.f32 %v59_v12  ;;  %v199_v20 = vadd.f32 -0.003921569, %v109_v18  ;;  %v111_v24 = vadd.f32 0.003921569, %v109_v18  ;;  %v46_v12 = vld [vmem:[%s385_s1] sm:$0xff] }
  0x17   :  { %208 = vpow2.f32 %v61_v13  ;;  %v47_v13 = vld [vmem:[%s385_s1 + $0x8] sm:$0xff] }
  0x23   :  { %v349_v21 = vpop.eup %206 }
  0x24   :  { %v351_v23 = vpop.eup %208  ;;  %v133_v26 = vmul.f32 %v349_v21, %v199_v20  ;;  %v113_v28 = vmul.f32 %v349_v21, %v111_v24 }
  0x25   :  { %v134_v27 = vmul.f32 %v351_v23, %v200_v22  ;;  %v114_v29 = vmul.f32 %v351_v23, %v112_v25  ;;  %v63_v22 = vmul.f32 %v349_v21, %v349_v21  ;;  %v64_v24 = vmul.f32 %v351_v23, %v351_v23 }
  0x26   :  { %v135_v30 = vmul.f32 0.044715, %v133_v26  ;;  %v115_v32 = vmul.f32 0.044715, %v113_v28 }
  0x27   :  { %v136_v31 = vmul.f32 0.044715, %v134_v27  ;;  %v116_v33 = vmul.f32 0.044715, %v114_v29 }
  0x28   :  { %v137_v34 = vmul.f32 %v135_v30, %v133_v26  ;;  %v117_v36 = vmul.f32 %v115_v32, %v113_v28 }
  0x29   :  { %v138_v35 = vmul.f32 %v136_v31, %v134_v27  ;;  %v118_v37 = vmul.f32 %v116_v33, %v114_v29 }
  0x2a   :  { %v139_v38 = vmul.f32 %v137_v34, %v133_v26  ;;  %v119_v40 = vmul.f32 %v117_v36, %v113_v28 }
  0x2b   :  { %v140_v39 = vmul.f32 %v138_v35, %v134_v27  ;;  %v120_v41 = vmul.f32 %v118_v37, %v114_v29 }
  0x2c   :  { %v141_v42 = vadd.f32 %v139_v38, %v133_v26  ;;  %v121_v44 = vadd.f32 %v119_v40, %v113_v28 }
  0x2d   :  { %v142_v43 = vadd.f32 %v140_v39, %v134_v27  ;;  %v122_v45 = vadd.f32 %v120_v41, %v114_v29 }
  0x2e   :  { %v143_v46 = vmul.f32 0.7978846, %v141_v42  ;;  %v123_v48 = vmul.f32 0.7978846, %v121_v44 }
  0x2f   :  { %v144_v47 = vmul.f32 0.7978846, %v142_v43  ;;  %v124_v49 = vmul.f32 0.7978846, %v122_v45 }
  0x30   :  { %210 = vtanh.f32 %v143_v46 }
  0x31   :  { %212 = vtanh.f32 %v144_v47 }
  0x32   :  { %214 = vtanh.f32 %v123_v48 }
  0x33   :  { %216 = vtanh.f32 %v124_v49 }
  0x3d   :  { %v211_v50 = vpop.eup %210 }
  0x3e   :  { %v213_v51 = vpop.eup %212  ;;  %v147_v55 = vadd.f32 1.0, %v211_v50  ;;  %v188_v50 = vld [vmem:[%s393_s9] sm:$0xff] }
  0x3f   :  { %v215_v52 = vpop.eup %214  ;;  %v148_v57 = vadd.f32 1.0, %v213_v51 }
  0x40   :  { %v217_v53 = vpop.eup %216  ;;  %v127_v54 = vadd.f32 1.0, %v215_v52  ;;  %v149_v59 = vmul.f32 0.5, %v147_v55 }
  0x41   :  { %v128_v56 = vadd.f32 1.0, %v217_v53  ;;  %v150_v61 = vmul.f32 0.5, %v148_v57 }
  0x42   :  { %v129_v58 = vmul.f32 0.5, %v127_v54  ;;  %v155_v62 = vsub.f32 1.0, %v149_v59 }
  0x43   :  { %v130_v60 = vmul.f32 0.5, %v128_v56  ;;  %v156_v0 = vsub.f32 1.0, %v150_v61 }
  0x44   :  { %v157_v63 = vsub.f32 %v129_v58, %v149_v59 }
  0x45   :  { %v158_v1 = vsub.f32 %v130_v60, %v150_v61 }
  0x46   :  { %v159_v2 = vsel %vm153_vm2, %v155_v62, %v157_v63 }
  0x47   :  { %v160_v3 = vsel %vm154_vm3, %v156_v0, %v158_v1  ;;  %v161_v4 = vsel %vm151_vm4, %v129_v58, %v159_v2 }
  0x48   :  { %v162_v5 = vsel %vm152_vm5, %v130_v60, %v160_v3  ;;  %v163_v6 = vmax.f32 %v161_v4, 1e-12 }
  0x49   :  { %v164_v7 = vmax.f32 %v162_v5, 1e-12 }
  0x4a   :  { %218 = vlog2.f32 %v163_v6 }
  0x4b   :  { %220 = vlog2.f32 %v164_v7 }
  0x57   :  { %v219_v30 = vpop.eup %218 }
  0x89   :  { %v68_v10 = vpop.permute.xlu0 %67  ;;  %v86_v11 = vpop.permute.xlu1 %85 }
  0x8a   :  { %v88_v18 = vsub.f32 %v319_v8, %v86_v11  ;;  %v89_v19 = vsub.f32 %v321_v9, %v86_v11  ;;  %v70_v25 = vmul.f32 %v68_v10, %v328_v14  ;;  %v71_v26 = vmul.f32 %v68_v10, %v338_v16  ;;  %v221_v8 = vpop.eup %220 }
  0x8b   :  { %v166_v14 = vmul.f32 0.6931472, %v219_v30  ;;  %v168_v38 = vmul.f32 0.6931472, %v221_v8 }
  0x8c   :  { %v197_v33 = vadd.f32 -1.0, %v88_v18  ;;  %v198_v9 = vadd.f32 -1.0, %v89_v19 }
  0x8d   :  { %v75_v20 = vpop.permute.xlu0 %74  ;;  %v95_v29 = vpop.permute.xlu1 %94  ;;  %v169_v45 = vsub.f32 0.0, %v166_v14  ;;  %v170_v46 = vsub.f32 0.0, %v168_v38 }
  0x8e   :  { %v77_v27 = vmul.f32 %v75_v20, %v46_v12  ;;  %v78_v28 = vmul.f32 %v75_v20, %v47_v13  ;;  %v97_v35 = vmul.f32 %v95_v29, %v63_v22  ;;  %v98_v36 = vmul.f32 %v95_v29, %v64_v24 }
  0x90   :  { %v79_v31 = vadd.f32 %v77_v27, %v70_v25  ;;  %v80_v32 = vadd.f32 %v78_v28, %v71_v26  ;;  %v99_v16 = vadd.f32 %v197_v33, %v97_v35  ;;  %v100_v39 = vadd.f32 %v198_v9, %v98_v36 }
  0x91   :  { %v175_v44 = vpop.permute.xlu0 %174 }
  0x92   :  { %v81_v34 = vsub.f32 %v79_v31, %v333_v15  ;;  %v82_v21 = vsub.f32 %v80_v32, %v343_v17  ;;  %vm176_vm6 = vcmp.eq.s32.totalorder %v175_v44, 1 }
  0x94   :  { %v101_v23 = vmul.f32 %v81_v34, %v81_v34  ;;  %v102_v37 = vmul.f32 %v82_v21, %v82_v21 }
  0x96   :  { %v103_v40 = vmul.f32 %v101_v23, %v63_v22  ;;  %v104_v41 = vmul.f32 %v102_v37, %v64_v24 }
  0x98   :  { %v105_v42 = vadd.f32 %v103_v40, %v99_v16  ;;  %v106_v43 = vadd.f32 %v104_v41, %v100_v39 }
  0x9a   :  { %v107_v47 = vmul.f32 0.5, %v105_v42  ;;  %v108_v48 = vmul.f32 0.5, %v106_v43 }
  0x9c   :  { %v177_v15 = vsel %vm176_vm6, %v169_v45, %v107_v47  ;;  %v178_v17 = vsel %vm176_vm6, %v170_v46, %v108_v48 }
  0x9d   :  { %v179_v49 = vadd.f32 %v178_v17, %v177_v15 }
  0x9f   :  { %180 = vadd.xlane.f32.xlu1 %v179_v49 }
 0x128   :  { %v181_v51 = vpop.xlane.xlu1 %180 }
 0x129   :  { %v189_v52 = vadd.f32 %v188_v50, %v181_v51 }
 0x12b   :  { %191 = vst.msk [vmem:[%s393_s9] sm:$0xff] %vm186_vm1, %v189_v52 }
 0x12c   :  { %196 = vsyncpa [#allocation3], 1 }

</bundles_post_ra>
